<compile_context>
chip_gen: v5e
topology: v5e:2x2
jax: 0.10.0
libtpu: 0.0.40
codegen_flags: <defaults>
</compile_context>

<pallas_src>
import numpy as np
import jax
import jax.numpy as jnp
from jax import lax
from jax.experimental import pallas as pl
from jax.experimental.pallas import tpu as pltpu

# ----------------------------------------------------------------------------
# Fixed Gaussian weights (from the module's __init__) and Charbonnier eps
# ----------------------------------------------------------------------------
_K1D = np.array([0.05, 0.25, 0.4, 0.25, 0.05], dtype=np.float32)
_EPS = 1e-6


def _gauss_toeplitz(n: int) -> np.ndarray:
    """Banded matrix A (n,n) such that (A @ v) == 1-D Gaussian conv of v with
    replicate ("edge") padding of 2 on both sides."""
    a = np.zeros((n, n), dtype=np.float32)
    for i in range(n):
        for t in range(-2, 3):
            j = min(max(i + t, 0), n - 1)
            a[i, j] += _K1D[t + 2]
    return a


# ----------------------------------------------------------------------------
# Pallas kernel: one (H, W) image (= one (n, c) plane of x - y) per grid step.
# ----------------------------------------------------------------------------
def edge_loss_kernel(ah_ref, awt_ref, x_ref, y_ref, o_ref, acc_ref):
    step = pl.program_id(0)
    last = pl.num_programs(0) - 1

    @pl.when(step == 0)
    def _():
        acc_ref[0] = jnp.float32(0.0)

    d = x_ref[...] - y_ref[...]                  # (H, W) f32, L(x)-L(y) == L(d)
    ah = ah_ref[...]                             # (H, H) row-conv Toeplitz
    awt = awt_ref[...]                           # (W, W) col-conv Toeplitz (transposed)
    H, W = d.shape

    def conv_gauss(img):
        # Depthwise separable 5x5 Gaussian + replicate pad == A_h @ img @ A_w^T
        t = jnp.dot(ah, img, preferred_element_type=jnp.float32)    # vertical pass
        return jnp.dot(t, awt, preferred_element_type=jnp.float32)  # horizontal pass

    g1 = conv_gauss(d)

    rows = lax.broadcasted_iota(jnp.int32, (H, W), 0)
    cols = lax.broadcasted_iota(jnp.int32, (H, W), 1)
    even = ((rows & 1) == 0) & ((cols & 1) == 0)
    new_filter = jnp.where(even, g1 * 4.0, 0.0)  # zeros; [::2, ::2] = g1[::2, ::2] * 4

    g2 = conv_gauss(new_filter)
    lap = d - g2

    acc_ref[0] += jnp.sum(jnp.sqrt(lap * lap + jnp.float32(_EPS)))

    @pl.when(step == last)
    def _():
        o_ref[0, 0] = acc_ref[0]


# ----------------------------------------------------------------------------
# Wrapper
# ----------------------------------------------------------------------------
def edge_loss(x, y):
    """x, y: (N, C, H, W) float32 -> scalar float32 loss (sum-Charbonnier)."""
    assert x.shape == y.shape and x.ndim == 4
    N, C, H, W = x.shape
    B = N * C

    xr = x.reshape(B, H, W).astype(jnp.float32)
    yr = y.reshape(B, H, W).astype(jnp.float32)
    ah = jnp.asarray(_gauss_toeplitz(H))         # (H, H)
    awt = jnp.asarray(_gauss_toeplitz(W).T)      # (W, W)

    out = pl.pallas_call(
        edge_loss_kernel,
        out_shape=jax.ShapeDtypeStruct((1, 1), jnp.float32),
        grid_spec=pltpu.PrefetchScalarGridSpec(
            num_scalar_prefetch=0,
            grid=(B,),
            in_specs=[
                # Conv matrices: same block every step -> fetched once, stay in VMEM.
                pl.BlockSpec((H, H), lambda b: (0, 0)),
                pl.BlockSpec((W, W), lambda b: (0, 0)),
                # One (H, W) plane per grid step (auto double-buffered).
                pl.BlockSpec((None, H, W), lambda b: (b, 0, 0)),
                pl.BlockSpec((None, H, W), lambda b: (b, 0, 0)),
            ],
            out_specs=pl.BlockSpec((1, 1), lambda b: (0, 0),
                                   memory_space=pltpu.MemorySpace.SMEM),
            scratch_shapes=[pltpu.SMEM((1,), jnp.float32)],
        ),
        compiler_params=pltpu.CompilerParams(
            dimension_semantics=("arbitrary",),      # sequential reduction over N*C
            vmem_limit_bytes=64 * 1024 * 1024,
        ),
    )(ah, awt, xr, yr)
    return out[0, 0]


# ----------------------------------------------------------------------------
# Pure-JAX reference (mirrors the PyTorch module) for a correctness check
# ----------------------------------------------------------------------------
def _edge_loss_ref(x, y):
    k2 = jnp.asarray(np.outer(_K1D, _K1D))

    def conv_gauss(img):
        H, W = img.shape[-2:]
        p = jnp.pad(img, ((0, 0), (0, 0), (2, 2), (2, 2)), mode="edge")
        out = jnp.zeros_like(img)
        for a in range(5):
            for b in range(5):
                out = out + k2[a, b] * p[:, :, a:a + H, b:b + W]
        return out

    def laplacian(c):
        f = conv_gauss(c)
        H, W = c.shape[-2:]
        rows = jnp.arange(H)[:, None]
        cols = jnp.arange(W)[None, :]
        even = ((rows % 2) == 0) & ((cols % 2) == 0)
        nf = jnp.where(even[None, None], f * 4.0, 0.0)
        return c - conv_gauss(nf)

    return jnp.sum(jnp.sqrt((laplacian(x) - laplacian(y)) ** 2 + _EPS))


# ----------------------------------------------------------------------------
# Driver
# ----------------------------------------------------------------------------
if __name__ == "__main__":
    key = jax.random.PRNGKey(0)
    kx, ky = jax.random.split(key)
    # EdgeLoss's PyTorch kernel is built with repeat(3, ...) -> C = 3.
    N, C, H, W = 2, 3, 16, 16
    x = jax.random.uniform(kx, (N, C, H, W), dtype=jnp.float32)
    y = jax.random.uniform(ky, (N, C, H, W), dtype=jnp.float32)

    loss = edge_loss(x, y)
    jax.block_until_ready(loss)
    assert jnp.isfinite(loss)

    ref = _edge_loss_ref(x, y)
    rel_err = abs(float(loss) - float(ref)) / max(1.0, abs(float(ref)))
    assert rel_err < 1e-3, (float(loss), float(ref))

    print("KERNEL_OK")
</pallas_src>

<mosaic_0001>
module attributes {stable_mosaic.version = 11 : i64} {
  func.func @edge_loss_kernel(%arg0: i32, %arg1: memref<16x16xf32, #tpu.memory_space<vmem>>, %arg2: memref<16x16xf32, #tpu.memory_space<vmem>>, %arg3: memref<1x16x16xf32, #tpu.memory_space<vmem>>, %arg4: memref<1x16x16xf32, #tpu.memory_space<vmem>>, %arg5: memref<1x1xf32, #tpu.memory_space<smem>>, %arg6: memref<1xf32, #tpu.memory_space<smem>>) attributes {dimension_semantics = [#tpu.dimension_semantics<arbitrary>], iteration_bounds = array<i64: 6>, scalar_prefetch = 0 : i64, scratch_operands = 1 : i64, tpu.core_type = #tpu.core_type<tc>, window_params = [{pipeline_mode = #tpu.pipeline_mode<synchronous>, transform_indices = @transform_0, window_bounds = array<i64: 16, 16>}, {pipeline_mode = #tpu.pipeline_mode<synchronous>, transform_indices = @transform_1, window_bounds = array<i64: 16, 16>}, {transform_indices = @transform_2, window_bounds = array<i64: 1, 16, 16>}, {transform_indices = @transform_3, window_bounds = array<i64: 1, 16, 16>}, {transform_indices = @transform_4, window_bounds = array<i64: 1, 1>}]} {
    %c0_i32 = arith.constant 0 : i32
    %0 = arith.cmpi eq, %arg0, %c0_i32 : i32
    %1 = arith.extui %0 : i1 to i32
    %c0_i32_0 = arith.constant 0 : i32
    %2 = arith.cmpi ne, %1, %c0_i32_0 : i32
    scf.if %2 {
      %cst_23 = arith.constant 0.000000e+00 : f32
      %c0_24 = arith.constant 0 : index
      %44 = memref.load %arg6[%c0_24] : memref<1xf32, #tpu.memory_space<smem>>
      memref.store %cst_23, %arg6[%c0_24] : memref<1xf32, #tpu.memory_space<smem>>
    } else {
    }
    %c0 = arith.constant 0 : index
    %c0_1 = arith.constant 0 : index
    %c0_2 = arith.constant 0 : index
    %3 = vector.load %arg3[%c0, %c0_1, %c0_2] : memref<1x16x16xf32, #tpu.memory_space<vmem>>, vector<1x16x16xf32>
    %4 = vector.shape_cast %3 : vector<1x16x16xf32> to vector<16x16xf32>
    %c0_3 = arith.constant 0 : index
    %c0_4 = arith.constant 0 : index
    %c0_5 = arith.constant 0 : index
    %5 = vector.load %arg4[%c0_3, %c0_4, %c0_5] : memref<1x16x16xf32, #tpu.memory_space<vmem>>, vector<1x16x16xf32>
    %6 = vector.shape_cast %5 : vector<1x16x16xf32> to vector<16x16xf32>
    %7 = arith.subf %4, %6 : vector<16x16xf32>
    %c0_6 = arith.constant 0 : index
    %c0_7 = arith.constant 0 : index
    %8 = vector.load %arg1[%c0_6, %c0_7] : memref<16x16xf32, #tpu.memory_space<vmem>>, vector<16x16xf32>
    %c0_8 = arith.constant 0 : index
    %c0_9 = arith.constant 0 : index
    %9 = vector.load %arg2[%c0_8, %c0_9] : memref<16x16xf32, #tpu.memory_space<vmem>>, vector<16x16xf32>
    %cst = arith.constant dense<0.000000e+00> : vector<16x16xf32>
    %10 = tpu.matmul %8, %7, %cst {dimension_numbers = #tpu.dot_dimension_numbers<[1], [0], [0], [1], [0, 0, 1, 1], [], []>} : vector<16x16xf32>, vector<16x16xf32>, vector<16x16xf32> -> vector<16x16xf32>
    %cst_10 = arith.constant dense<0.000000e+00> : vector<16x16xf32>
    %11 = tpu.matmul %10, %9, %cst_10 {dimension_numbers = #tpu.dot_dimension_numbers<[1], [0], [0], [1], [0, 0, 1, 1], [], []>} : vector<16x16xf32>, vector<16x16xf32>, vector<16x16xf32> -> vector<16x16xf32>
    %12 = tpu.iota {dimensions = array<i32: 0>} : vector<16x16xi32>
    %13 = tpu.iota {dimensions = array<i32: 1>} : vector<16x16xi32>
    %c1_i32 = arith.constant 1 : i32
    %14 = vector.broadcast %c1_i32 : i32 to vector<16x16xi32>
    %15 = arith.andi %12, %14 : vector<16x16xi32>
    %c0_i32_11 = arith.constant 0 : i32
    %16 = vector.broadcast %c0_i32_11 : i32 to vector<16x16xi32>
    %17 = arith.cmpi eq, %15, %16 : vector<16x16xi32>
    %c1_i32_12 = arith.constant 1 : i32
    %18 = vector.broadcast %c1_i32_12 : i32 to vector<16x16xi32>
    %19 = arith.andi %13, %18 : vector<16x16xi32>
    %c0_i32_13 = arith.constant 0 : i32
    %20 = vector.broadcast %c0_i32_13 : i32 to vector<16x16xi32>
    %21 = arith.cmpi eq, %19, %20 : vector<16x16xi32>
    %22 = arith.andi %17, %21 : vector<16x16xi1>
    %cst_14 = arith.constant 4.000000e+00 : f32
    %23 = vector.broadcast %cst_14 : f32 to vector<16x16xf32>
    %24 = arith.mulf %11, %23 : vector<16x16xf32>
    %cst_15 = arith.constant 0.000000e+00 : f32
    %25 = vector.broadcast %cst_15 : f32 to vector<16x16xf32>
    %26 = arith.select %22, %24, %25 : vector<16x16xi1>, vector<16x16xf32>
    %cst_16 = arith.constant dense<0.000000e+00> : vector<16x16xf32>
    %27 = tpu.matmul %8, %26, %cst_16 {dimension_numbers = #tpu.dot_dimension_numbers<[1], [0], [0], [1], [0, 0, 1, 1], [], []>} : vector<16x16xf32>, vector<16x16xf32>, vector<16x16xf32> -> vector<16x16xf32>
    %cst_17 = arith.constant dense<0.000000e+00> : vector<16x16xf32>
    %28 = tpu.matmul %27, %9, %cst_17 {dimension_numbers = #tpu.dot_dimension_numbers<[1], [0], [0], [1], [0, 0, 1, 1], [], []>} : vector<16x16xf32>, vector<16x16xf32>, vector<16x16xf32> -> vector<16x16xf32>
    %29 = arith.subf %7, %28 : vector<16x16xf32>
    %c0_18 = arith.constant 0 : index
    %30 = memref.load %arg6[%c0_18] : memref<1xf32, #tpu.memory_space<smem>>
    %31 = arith.mulf %29, %29 : vector<16x16xf32>
    %cst_19 = arith.constant 9.99999997E-7 : f32
    %32 = vector.broadcast %cst_19 : f32 to vector<16x16xf32>
    %33 = arith.addf %31, %32 : vector<16x16xf32>
    %34 = math.sqrt %33 : vector<16x16xf32>
    %35 = vector.shape_cast %34 : vector<16x16xf32> to vector<1x16x16xf32>
    %cst_20 = arith.constant dense<0.000000e+00> : vector<1xf32>
    %36 = vector.multi_reduction <add>, %35, %cst_20 [1, 2] : vector<1x16x16xf32> to vector<1xf32>
    %37 = vector.shape_cast %36 : vector<1xf32> to vector<1x1x1xf32>
    %38 = vector.extract %37[0, 0, 0] : f32 from vector<1x1x1xf32>
    %39 = arith.addf %30, %38 : f32
    %c0_21 = arith.constant 0 : index
    %40 = memref.load %arg6[%c0_21] : memref<1xf32, #tpu.memory_space<smem>>
    memref.store %39, %arg6[%c0_21] : memref<1xf32, #tpu.memory_space<smem>>
    %c5_i32 = arith.constant 5 : i32
    %41 = arith.cmpi eq, %arg0, %c5_i32 : i32
    %42 = arith.extui %41 : i1 to i32
    %c0_i32_22 = arith.constant 0 : i32
    %43 = arith.cmpi ne, %42, %c0_i32_22 : i32
    scf.if %43 {
      %c0_23 = arith.constant 0 : index
      %44 = memref.load %arg6[%c0_23] : memref<1xf32, #tpu.memory_space<smem>>
      %c0_24 = arith.constant 0 : index
      %c0_25 = arith.constant 0 : index
      %45 = memref.load %arg5[%c0_24, %c0_25] : memref<1x1xf32, #tpu.memory_space<smem>>
      memref.store %44, %arg5[%c0_24, %c0_25] : memref<1x1xf32, #tpu.memory_space<smem>>
    } else {
    }
    return
  }
  func.func @transform_0(%arg0: i32) -> (i32, i32) {
    %c0_i32 = arith.constant 0 : i32
    %c0_i32_0 = arith.constant 0 : i32
    %c0_i32_1 = arith.constant 0 : i32
    return %c0_i32, %c0_i32_0 : i32, i32
  }
  func.func @transform_1(%arg0: i32) -> (i32, i32) {
    %c0_i32 = arith.constant 0 : i32
    %c0_i32_0 = arith.constant 0 : i32
    %c0_i32_1 = arith.constant 0 : i32
    return %c0_i32, %c0_i32_0 : i32, i32
  }
  func.func @transform_2(%arg0: i32) -> (i32, i32, i32) {
    %c0_i32 = arith.constant 0 : i32
    %c0_i32_0 = arith.constant 0 : i32
    %c0_i32_1 = arith.constant 0 : i32
    return %arg0, %c0_i32, %c0_i32_0 : i32, i32, i32
  }
  func.func @transform_3(%arg0: i32) -> (i32, i32, i32) {
    %c0_i32 = arith.constant 0 : i32
    %c0_i32_0 = arith.constant 0 : i32
    %c0_i32_1 = arith.constant 0 : i32
    return %arg0, %c0_i32, %c0_i32_0 : i32, i32, i32
  }
  func.func @transform_4(%arg0: i32) -> (i32, i32) {
    %c0_i32 = arith.constant 0 : i32
    %c0_i32_0 = arith.constant 0 : i32
    %c0_i32_1 = arith.constant 0 : i32
    return %c0_i32, %c0_i32_0 : i32, i32
  }
}

</mosaic_0001>

<bundles_post_ra>
// kernel: tpu_custom_call.1
= control target key start
LH: loop header
LB: loop body
LE: loop exit
PB: predicated region body
PF: predicated region fallthrough
CT: control target
= control target key end

     0   :  { %s1078_s0 = inlined_call_operand.hbm [shape: f32[16,16], index: 0, kind: input, shape index: {}]   ;;  %s1079_s1 = inlined_call_operand.hbm [shape: f32[16,16], index: 1, kind: input, shape index: {}]   ;;  %s1080_s2 = inlined_call_operand.hbm [shape: f32[6,16,16], index: 2, kind: input, shape index: {}]   ;;  %s1081_s3 = inlined_call_operand.hbm [shape: f32[6,16,16], index: 3, kind: input, shape index: {}]   ;;  %s1082_s4 = inlined_call_operand.hbm [shape: f32[1,1], index: 4, kind: output, shape index: {}]  }
   0x1   :  { %1086 = sst [smem:[#allocation15_spill]] %s1078_s0 }
   0x2   :  { %9 = vsyncpa [#allocation4], 0 }
   0x3   :  { %10 = vsyncpa [#allocation7], 0 }
   0x4   :  { %11 = vsyncpa [#allocation5], 0  ;;  %s904_s15 = smov 0   ;;  %s906_s16 = smov 0  }
   0x5   :  { %s908_s17 = smov 0   ;;  %s910_s18 = smov 0  }
   0x6 LB: > { %s923_s19 = sadd.s32 4294967295, %s871_s18   ;;  %p79_p0 = scmp.ne.s32.totalorder %s863_s16, %s859_s15  ;;  %s871_s18 = sphi %s910_s18, %s1097_s18   ;;  %s867_s17 = sphi %s908_s17, %s1096_s17   ;;  %s863_s16 = sphi %s906_s16, %s1095_s16   ;;  %s859_s15 = sphi %s904_s15, %s1094_s15  }
   0x7   : > { %p80_p1 = scmp.eq.s32.totalorder %s923_s19, 0  ;;  %p571_p2 = scmp.ge.s32.totalorder %s871_s18, 1 }
   0x8   : > { %p137_p3 = scmp.lt.s32.totalorder %s871_s18, 7  ;;  %s1088_s0 = sld [smem:[#allocation15_spill]] }
   0x9   : > { %p931_p4 = por %p80_p1, %p79_p0  ;;  %s873_s25 = smov [#allocation3]  }
   0xa   : > { %p938_p5 = pnand %p571_p2, %p137_p3  ;;  %s150_s26 = sshll.u32 %s873_s25, 4  ;;  %s151_s26 = int_to_ptr.vmem [resolvable:$true] %s150_s26 }
   0xb   : > { %s951_s28 = sadd.s32 1, %s871_s18   ;;  %s1084_s29 = smov 128  }
   0xc   : > { %p626_p6 = pneg %p938_p5  ;;  %s875_s30 = smov 8  }
   0xd   : > { %s63_s5 = ssub.s32 %s871_s18, %s951_s28  ;;  %s66_s6 = sadd.s32 1, %s867_s17 }
   0xe   : > { %s148_s23 = sshll.u32 %s1088_s0, 4  ;;  %p946_p7 = pnand %p626_p6, %p80_p1  ;;  %s149_s23 = int_to_ptr.hbm [resolvable:$true] %s148_s23 }
   0xf   : > { %p64_p8 = scmp.eq.s32.totalorder %s63_s5, 0  ;;  %p73_p9 = scmp.ne.s32.totalorder %s867_s17, %s863_s16 }
  0x10   : > { %629 = dma.hbm_to_vmem [thread:$0]  (!%p946_p7), %s149_s23, 256, %s151_s26, [#allocation4], %s1084_s29, %s1084_s29, %s875_s30  }
  0x11   : > { %p74_p10 = scmp.eq.s32.totalorder %s871_s18, 0  ;;  %p642_p11 = scmp.lt.s32.totalorder %s871_s18, 6 }
  0x12   : > { %s966_s7 = scalar_select %p64_p8, %s867_s17, %s66_s6  }
  0x13   : > { %p75_p12 = por %p74_p10, %p73_p9  ;;  %s178_s8 = sand.u32 1, %s871_s18  }
  0x14   : > { %s180_s9 = sand.u32 1, %s867_s17   ;;  %s1083_s11 = sshll.u32 %s871_s18, 4 }
  0x15   : > { %s970_s10 = sshll.u32 %s180_s9, 4  ;;  %s187_s14 = scalar_lea.hbm %s1080_s2, %s1083_s11 }
  0x16   : > { %s188_s15 = sshll.u32 %s187_s14, 4  ;;  %s182_s21 = scalar_lea.vmem [#allocation8], %s970_s10  ;;  %s189_s15 = int_to_ptr.hbm [resolvable:$true] %s188_s15 }
  0x17   : > { %s190_s22 = sshll.u32 %s182_s21, 4  ;;  %p981_p13 = pnand %p642_p11, %p75_p12  ;;  %s191_s22 = int_to_ptr.vmem [resolvable:$true] %s190_s22 }
  0x18   : > { %s162_s5 = sshll.u32 %s1079_s1, 4  ;;  %s876_s6 = smov [#allocation6]   ;;  %s163_s5 = int_to_ptr.hbm [resolvable:$true] %s162_s5 }
  0x19   : > { %s164_s9 = sshll.u32 %s876_s6, 4  ;;  %s988_s12 = scalar_lea.sflag [#allocation4], %s178_s8  ;;  %s165_s9 = int_to_ptr.vmem [resolvable:$true] %s164_s9 }
  0x1a   : > { %s721_s13 = sshra.s32 %s189_s15, 4  ;;  %p725_p2 = pneg %p981_p13  ;;  %s722_s13 = int_to_ptr.hbm [resolvable:$true] %s721_s13 }
  0x1b   : > { %s723_s14 = scalar_lea.hbm %s722_s13, 16  ;;  %s728_s26 = scalar_lea.hbm %s1080_s2, 96 }
  0x1c   : > { %p724_p0 = scmp.ne.s32.totalorder %s722_s13, %s723_s14  ;;  %p729_p8 = scmp.lt.s32.totalorder %s722_s13, %s1080_s2 }
  0x1d   : > { %p730_p9 = scmp.lt.s32.totalorder %s728_s26, %s723_s14 }
  0x1e   : > { %p726_p3 = pnand %p725_p2, %p724_p0 }
  0x1f   : > { %p731_p10 = por %p730_p9, %p729_p8 }
  0x20   : > { %p727_p6 = pneg %p726_p3 }
  0x22   : > { %p732_p11 = pnand %p731_p10, %p727_p6 }
  0x24   : > { %735 = shalt.err (!%p732_p11)
}
  0x25   : > { %s1092_s8 = smov 128   ;;  %s1093_s29 = sshll.u32 %s871_s18, 4 }
  0x26   : > { %636 = dma.hbm_to_vmem [thread:$0]  (!%p981_p13), %s189_s15, 256, %s191_s22, %s988_s12, %s1092_s8, %s1092_s8, %s875_s30  }
  0x27   : > { %632 = dma.hbm_to_vmem [thread:$0]  (!%p946_p7), %s163_s5, 256, %s165_s9, [#allocation7], %s1092_s8, %s1092_s8, %s875_s30  }
  0x28   : > { %s209_s13 = scalar_lea.hbm %s1081_s3, %s1093_s29  ;;  %s204_s14 = scalar_lea.vmem [#allocation9], %s970_s10 }
  0x29   : > { %s212_s21 = sshll.u32 %s204_s14, 4  ;;  %s210_s25 = sshll.u32 %s209_s13, 4  ;;  %s213_s21 = int_to_ptr.vmem [resolvable:$true] %s212_s21  ;;  %s211_s25 = int_to_ptr.hbm [resolvable:$true] %s210_s25 }
  0x2a   : > { %s781_s26 = sshra.s32 %s211_s25, 4  ;;  %s788_s18 = scalar_lea.hbm %s1081_s3, 96  ;;  %s782_s26 = int_to_ptr.hbm [resolvable:$true] %s781_s26 }
  0x2b   : > { %s783_s0 = scalar_lea.hbm %s782_s26, 16  ;;  %p789_p7 = scmp.lt.s32.totalorder %s782_s26, %s1081_s3 }
  0x2c   : > { %p784_p12 = scmp.ne.s32.totalorder %s782_s26, %s783_s0  ;;  %p790_p6 = scmp.lt.s32.totalorder %s788_s18, %s783_s0 }
  0x2e   : > { %p786_p0 = pnand %p784_p12, %p725_p2  ;;  %p791_p8 = por %p790_p6, %p789_p7 }
  0x30   : > { %p787_p3 = pneg %p786_p0 }
  0x32   : > { %p792_p9 = pnand %p791_p8, %p787_p3 }
  0x34   : > { %795 = shalt.err (!%p792_p9)
}
  0x35   : > { %639 = dma.hbm_to_vmem [thread:$0]  (!%p981_p13), %s211_s25, 256, %s213_s21, %s988_s12, %s1092_s8, %s1092_s8, %s875_s30  }
  0x36   : > { %224 = sbr.rel (%p938_p5) target bundleno = 826 (0x33a), region = 36 }
  0x3b   : > { %842 = dma.done.wait (%p80_p1), [#allocation4], 256  }
  0x3c   : > { %844 = vsyncadd (%p80_p1), [#allocation4], 4294967040 }
  0x3d   : > { %846 = dma.done.wait (%p80_p1), [#allocation7], 256  }
  0x3e   : > { %848 = vsyncadd (%p80_p1), [#allocation7], 4294967040  ;;  %s236_s0 = sand.u32 1, %s923_s19   ;;  %s238_s30 = sand.u32 1, %s863_s16  }
  0x3f   : > { %s584_s10 = sshll.u32 %s238_s30, 4  ;;  %s237_s24 = scalar_lea.sflag [#allocation4], %s236_s0 }
  0x40   : > { %s240_s23 = scalar_lea.vmem [#allocation8], %s584_s10 }
  0x41   : > { %850 = dma.done.wait (%p931_p4), %s237_s24, 512  }
  0x42   : > { %852 = vsyncadd (%p931_p4), %s237_s24, 4294966784  ;;  %v283_v0 = vld [vmem:[%s240_s23 + $0x8] sm:$0xff]  ;;  %s250_s9 = scalar_lea.vmem [#allocation9], %s584_s10  ;;  %v282_v2 = vld [vmem:[%s240_s23] sm:$0xff]  ;;  %vm292_vm0 = vcmask 130048   ;;  %v351_v12 = vlaneseq  ;;  %s877_s20 = smov 0.0  }
  0x43   : > { %v285_v1 = vld [vmem:[%s250_s9 + $0x8] sm:$0xff]  ;;  %v284_v4 = vld [vmem:[%s250_s9] sm:$0xff]  ;;  %619 = sst [smem:[#allocation2]] (%p80_p1), %s877_s20  ;;  %s479_s11 = sshll.u32 %s1082_s4, 4  ;;  %s480_s11 = int_to_ptr.hbm [resolvable:$true] %s479_s11 }
  0x44   : > { %v287_v3 = vsub.f32 %v283_v0, %v285_v1  ;;  %v286_v5 = vsub.f32 %v282_v2, %v284_v4  ;;  %v291_v6 = vld [vmem:[#allocation6 + $0x8] sm:$0xff]  ;;  %v288_v7 = vld [vmem:[#allocation3] sm:$0xff]  ;;  %v289_v8 = vld [vmem:[#allocation3 + $0x8] sm:$0xff]  ;;  %v352_v13 = vshrl.u32 %v351_v12, 7  ;;  %v355_v15 = vand.u32 127, %v351_v12  ;;  %s422_s12 = sld [smem:[#allocation2]] }
  0x45   : > { %342 = vmatpush.msra.mxu1 %v291_v6  ;;  %411 = vmatpush.msra.mxu3 %v291_v6  ;;  %v290_v9 = vld [vmem:[#allocation6] sm:$0xff]  ;;  %p646_p4 = scmp.eq.s32.totalorder %s923_s19, 5  ;;  %s878_s14 = smov [#allocation10]  }
  0x46   : > { %313 = vmatpush.msra.mxu0 %v287_v3  ;;  %v353_v14 = vadd.s32 8, %v352_v13  ;;  %v360_v18 = vand.u32 1, %v355_v15  ;;  %v356_v19 = vand.u32 1, %v352_v13 }
  0x47   : > { %343 = vmatpush.msra.mxu1 %v290_v9  ;;  %412 = vmatpush.msra.mxu3 %v290_v9 }
  0x48   : > { %314 = vmatpush.msra.mxu0 %v286_v5  ;;  %v357_v17 = vand.u32 1, %v353_v14  ;;  %vm361_vm2 = vcmp.eq.s32.totalorder %v360_v18, 0  ;;  %vm358_vm3 = vcmp.eq.s32.totalorder %v356_v19, 0 }
  0x49   : > { %587 = vmatmul.msk.f32.vlgmr.msra.gmra.mxu0 %vm292_vm0, %v288_v7  ;;  %vm362_vm5 = vmand %vm358_vm3, %vm361_vm2 }
  0x4a   : > { %vm359_vm1 = vcmp.eq.s32.totalorder %v357_v17, 0 }
  0x4b   : > { %vm363_vm4 = vmand %vm359_vm1, %vm361_vm2 }
  0x51   : > { %588 = vmatmul.msk.f32.gmra.mxu0 %vm292_vm0, %v289_v8 }
  0xc6   : > { %v316_v10 = vpop.f32.mrf.mxu0 }
  0xc7   : > { %589 = vmatmul.msk.f32.vlgmr.msra.gmra.mxu1 %vm292_vm0, %v316_v10 }
  0xce   : > { %v319_v11 = vpop.f32.mrf.mxu0 }
  0xcf   : > { %590 = vmatmul.msk.f32.gmra.mxu1 %vm292_vm0, %v319_v11 }
 0x144   : > { %v345_v16 = vpop.f32.mrf.mxu1 }
 0x145   : > { %v364_v22 = vmul.f32 4.0, %v345_v16 }
 0x14c   : > { %v348_v20 = vpop.f32.mrf.mxu1 }
 0x14d   : > { %v365_v21 = vmul.f32 4.0, %v348_v20 }
 0x14f   : > { %591 = vmatpush.msk.msra.mxu2 %vm363_vm4, %v365_v21 }
 0x151   : > { %592 = vmatpush.msk.msra.mxu2 %vm362_vm5, %v364_v22 }
 0x152   : > { %593 = vmatmul.msk.f32.vlgmr.msra.gmra.mxu2 %vm292_vm0, %v288_v7 }
 0x15a   : > { %594 = vmatmul.msk.f32.gmra.mxu2 %vm292_vm0, %v289_v8 }
 0x1d5   : > { %v385_v23 = vpop.f32.mrf.mxu2 }
 0x1d6   : > { %595 = vmatmul.msk.f32.vlgmr.msra.gmra.mxu3 %vm292_vm0, %v385_v23 }
 0x1dd   : > { %v388_v24 = vpop.f32.mrf.mxu2 }
 0x1de   : > { %596 = vmatmul.msk.f32.gmra.mxu3 %vm292_vm0, %v388_v24 }
 0x259   : > { %v414_v25 = vpop.f32.mrf.mxu3 }
 0x25a   : > { %v420_v26 = vsub.f32 %v286_v5, %v414_v25 }
 0x25c   : > { %v423_v27 = vmul.f32 %v420_v26, %v420_v26 }
 0x25e   : > { %v425_v28 = vadd.f32 1e-06, %v423_v27 }
 0x260   : > { %687 = vrsqrt.f32 %v425_v28  ;;  %vm434_vm6 = vcmp.eq.f32.partialorder %v425_v28, inf  ;;  %v437_v47 = vand.u32 2147483648, %v425_v28  ;;  %vm436_vm7 = vcmp.eq.f32.partialorder %v425_v28, 0.0 }
 0x261   : > { %v417_v29 = vpop.f32.mrf.mxu3 }
 0x262   : > { %v421_v30 = vsub.f32 %v287_v3, %v417_v29 }
 0x264   : > { %v424_v31 = vmul.f32 %v421_v30, %v421_v30 }
 0x266   : > { %v688_v32 = vpop.eup %687  ;;  %v426_v33 = vadd.f32 1e-06, %v424_v31 }
 0x267   : > { %v428_v34 = vmul.f32 %v688_v32, %v425_v28 }
 0x268   : > { %689 = vrsqrt.f32 %v426_v33  ;;  %vm446_vm8 = vcmp.eq.f32.partialorder %v426_v33, inf  ;;  %v449_v50 = vand.u32 2147483648, %v426_v33  ;;  %vm448_vm9 = vcmp.eq.f32.partialorder %v426_v33, 0.0 }
 0x269   : > { %v429_v35 = vmul.f32 %v688_v32, %v428_v34 }
 0x26b   : > { %v430_v36 = vmul.f32 0.5, %v429_v35 }
 0x26d   : > { %v431_v37 = vsub.f32 1.5, %v430_v36 }
 0x26e   : > { %v690_v38 = vpop.eup %689 }
 0x26f   : > { %v432_v39 = vmul.f32 %v688_v32, %v431_v37  ;;  %v440_v40 = vmul.f32 %v690_v38, %v426_v33 }
 0x271   : > { %v441_v41 = vmul.f32 %v690_v38, %v440_v40  ;;  %v433_v42 = vmul.f32 %v432_v39, %v425_v28 }
 0x273   : > { %v442_v43 = vmul.f32 0.5, %v441_v41  ;;  %v435_v45 = vsel %vm434_vm6, %v425_v28, %v433_v42 }
 0x274   : > { %v438_v49 = vsel %vm436_vm7, %v437_v47, %v435_v45 }
 0x275   : > { %v443_v44 = vsub.f32 1.5, %v442_v43  ;;  %v451_v53 = vsel %vm292_vm0, %v438_v49, 0.0 }
 0x277   : > { %v444_v46 = vmul.f32 %v690_v38, %v443_v44 }
 0x279   : > { %v445_v48 = vmul.f32 %v444_v46, %v426_v33 }
 0x27b   : > { %v447_v51 = vsel %vm446_vm8, %v426_v33, %v445_v48 }
 0x27c   : > { %v450_v52 = vsel %vm448_vm9, %v449_v50, %v447_v51 }
 0x27d   : > { %v452_v54 = vsel %vm292_vm0, %v450_v52, 0.0 }
 0x27e   : > { %v453_v55 = vadd.f32 %v452_v54, %v451_v53 }
 0x280   : > { %454 = vadd.xlane.f32.xlu0 %v453_v55 }
 0x2f3   : > { %v455_v56 = vpop.xlane.xlu0 %454 }
 0x2f4   : > { %v456_v57 = vrot.slane %v455_v56, 4 }
 0x2f6   : > { %v457_v58 = vadd.f32 %v456_v57, %v455_v56 }
 0x2f8   : > { %v458_v59 = vrot.slane %v457_v58, 2 }
 0x2fa   : > { %v459_v60 = vadd.f32 %v458_v59, %v457_v58 }
 0x2fc   : > { %v460_v61 = vrot.slane %v459_v60, 1 }
 0x2fe   : > { %v461_v62 = vadd.f32 %v460_v61, %v459_v60 }
 0x300   : > { %604 = vpush %v461_v62 }
 0x331   : > { %s605_s6 = spop %604 }
 0x332   : > { %s463_s13 = sadd.f32 %s605_s6, %s422_s12 }
 0x334   : > { %465 = sst [smem:[#allocation2]] %s463_s13 }
 0x335   : > { %621 = sst [smem:[#allocation10]] (%p646_p4), %s463_s13 }
 0x336   : > { %623 = dma.smem_to_hbm (%p646_p4), %s878_s14, 16, %s480_s11, [#allocation5]  }
 0x337   : > { %854 = dma.done.wait (%p646_p4), [#allocation5], 16  }
 0x338   : > { %856 = vsyncadd (%p646_p4), [#allocation5], 4294967280 }
 0x339   : > { %488 = sfence }
 0x33a PF: > { %p14_p1 = scmp.ge.s32.totalorder %s951_s28, 8   ;;  %s1094_s15 = smov %s863_s16 }
 0x33b   : > { %s1095_s16 = smov %s867_s17  ;;  %s1096_s17 = smov %s966_s7 }
 0x33c   : > { %s1097_s18 = smov %s951_s28  ;;  %16 = sbr.rel (!%p14_p1) target bundleno = 6 (0x6), region = 102 }
 0x341   :  { %494 = vsyncpa [#allocation4], 1 }
 0x342   :  { %496 = vsyncpa [#allocation4 + $0x1], 1 }
 0x343   :  { %497 = vsyncpa [#allocation7], 1 }
 0x344   :  { %498 = vsyncpa [#allocation5], 1 }
 0x345   :  { %500 = vsyncpa [#allocation5 + $0x1], 1 }

</bundles_post_ra>
